<compile_context>
chip_gen: v7x
topology: tpu7x:2x2x1
jax: 0.10.0
libtpu: 0.0.40
codegen_flags: <defaults>
</compile_context>

<pallas_src>
import functools

import jax
import jax.numpy as jnp
from jax.experimental import pallas as pl
from jax.experimental.pallas import tpu as pltpu


def _im2col_taps(xb, lpos, *, K, P, L):
    """Build im2col columns (K*C, N) from a lane-dense activation tile.

    xb   : (C, N) bf16, N = Bb*L, batch segments of length L laid out along lanes
    lpos : (1, N) int32, position-within-segment (0..L-1) for every lane

    tap k at column j=b*L+l must be xb[:, b*L + (l+k-P)] when 0 <= l+k-P < L
    and 0 otherwise.  A *global* lane shift of k-P gives exactly that value for
    every valid (l, k); positions where l+k-P falls outside [0, L) (which is
    also where a global shift would leak across batch segments) are masked to
    zero -- this mask IS the conv's zero padding, so no padded copy of the
    activation ever exists.
    """
    C, N = xb.shape
    zeros = jnp.zeros((C, P), xb.dtype)
    ext = jnp.concatenate([zeros, xb, zeros], axis=1)     # (C, N + 2P)
    pieces = []
    for k in range(K):
        tap = ext[:, k:k + N]                             # global shift by k-P
        if k < P:                                         # needs l >= P-k
            tap = jnp.where(lpos >= (P - k), tap, 0)
        elif k > P:                                       # needs l < L-(k-P)
            tap = jnp.where(lpos < (L - (k - P)), tap, 0)
        pieces.append(tap)
    return jnp.concatenate(pieces, axis=0)                # (K*C, N) bf16


def _cnn_kernel(x_ref, w1_ref, w2_ref, t1_ref, t2_ref, out_ref, *, K, L, C, Bb):
    """One batch block of Bb elements per grid step.

    x_ref  : (Bb, C, L) f32   raw PyTorch NCL block (no pre-pad, no transpose)
    w1/w2  : (C, K*C)    bf16 im2col weights with the BN scale folded in
    t1/t2  : (C, 1)      f32  per-output-channel shift (conv bias + BN folded)
    out_ref: (Bb, C, L)  f32
    """
    P = K // 2
    N = Bb * L

    w1 = w1_ref[...]
    w2 = w2_ref[...]
    t1 = t1_ref[...]
    t2 = t2_ref[...]

    # Assemble the whole batch block as ONE lane-dense (C, Bb*L) tile.
    x_f32 = jnp.concatenate([x_ref[b] for b in range(Bb)], axis=-1)  # (C, N)
    x_bf = x_f32.astype(jnp.bfloat16)                                # cast once

    # Position-within-segment for every lane (used by the padding masks).
    lane = jax.lax.broadcasted_iota(jnp.int32, (1, L), 1)
    lpos = jnp.concatenate([lane] * Bb, axis=-1)                     # (1, N)

    # ---- conv1 + BN1 + ReLU : one MXU matmul, N = Bb*L ----
    cols1 = _im2col_taps(x_bf, lpos, K=K, P=P, L=L)                  # (K*C, N)
    acc1 = jnp.dot(w1, cols1, preferred_element_type=jnp.float32)    # (C, N)
    h1 = jnp.maximum(acc1 + t1, 0.0)                                 # dropout=id

    # ---- conv2 + BN2 + ReLU ----
    cols2 = _im2col_taps(h1.astype(jnp.bfloat16), lpos, K=K, P=P, L=L)
    acc2 = jnp.dot(w2, cols2, preferred_element_type=jnp.float32)
    h2 = jnp.maximum(acc2 + t2, 0.0)

    # ---- residual add, then scatter back to the NCL output block ----
    out = h2 + x_f32                                                 # (C, N) f32
    for b in range(Bb):
        out_ref[b] = out[:, b * L:(b + 1) * L]


def _pick_block_b(B, L, max_lanes=128):
    """Largest divisor of B such that (a) the lane-dense tile Bb*L stays within
    one 128-lane group and (b) the grid keeps >= 2 steps when B >= 2 (so both
    v7x TensorCores get work)."""
    max_bb = max(1, max_lanes // max(L, 1))
    best = 1
    for cand in range(1, min(B, max_bb) + 1):
        if B % cand != 0:
            continue
        if B == 1 or (B // cand) >= 2:
            best = cand
    return best


def cnn_forward(x, w1, b1, g1, be1, m1, v1, w2, b2, g2, be2, m2, v2,
                *, eps=1e-5, kernel_size=9, block_b=None):
    """x: (B, C, L) float32, PyTorch Conv1d layout.  Returns (B, C, L)."""
    B, C, L = x.shape
    K = kernel_size
    Bb = _pick_block_b(B, L) if block_b is None else block_b
    assert B % Bb == 0, (B, Bb)

    # Weight / BN folding (weights only -- the activation never touches XLA).
    def fold(w, bias, gamma, beta, mean, var):
        scale = gamma * jax.lax.rsqrt(var + eps)                       # (C,)
        w2d = jnp.transpose(w, (0, 2, 1)).reshape(C, K * C)            # [o, k*C+c]
        w2d = (w2d * scale[:, None]).astype(jnp.bfloat16)              # fold BN scale
        shift = (scale * (bias - mean) + beta).reshape(C, 1).astype(jnp.float32)
        return w2d, shift

    w1_2d, t1 = fold(w1, b1, g1, be1, m1, v1)
    w2_2d, t2 = fold(w2, b2, g2, be2, m2, v2)

    kern = functools.partial(_cnn_kernel, K=K, L=L, C=C, Bb=Bb)

    return pl.pallas_call(
        kern,
        out_shape=jax.ShapeDtypeStruct((B, C, L), jnp.float32),
        grid_spec=pl.GridSpec(
            grid=(B // Bb,),
            in_specs=[
                pl.BlockSpec((Bb, C, L), lambda b: (b, 0, 0)),   # x (NCL, f32)
                pl.BlockSpec((C, K * C), lambda b: (0, 0)),      # w1 (bf16)
                pl.BlockSpec((C, K * C), lambda b: (0, 0)),      # w2 (bf16)
                pl.BlockSpec((C, 1), lambda b: (0, 0)),          # shift1
                pl.BlockSpec((C, 1), lambda b: (0, 0)),          # shift2
            ],
            out_specs=pl.BlockSpec((Bb, C, L), lambda b: (b, 0, 0)),
        ),
        compiler_params=pltpu.CompilerParams(
            dimension_semantics=("parallel",)),
    )(x, w1_2d, w2_2d, t1, t2)


# ---------------- pure-JAX reference (for correctness check) ----------------
def cnn_reference(x, w1, b1, g1, be1, m1, v1, w2, b2, g2, be2, m2, v2,
                  eps=1e-5):
    def conv_bn_relu(h, w, b, g, be, m, v):
        y = jax.lax.conv_general_dilated(
            h, w, window_strides=(1,), padding="SAME",
            dimension_numbers=("NCH", "OIH", "NCH"))
        y = y + b[None, :, None]
        y = (y - m[None, :, None]) * (g * jax.lax.rsqrt(v + eps))[None, :, None]
        y = y + be[None, :, None]
        return jnp.maximum(y, 0.0)

    h = conv_bn_relu(x, w1, b1, g1, be1, m1, v1)
    h = conv_bn_relu(h, w2, b2, g2, be2, m2, v2)
    return h + x


if __name__ == "__main__":
    C, L, K = 32, 16, 9   # hidden_dim (channels), seq length, kernel size

    def make_params(key):
        ks = jax.random.split(key, 10)
        w1 = jax.random.normal(ks[0], (C, C, K), jnp.float32) * 0.05
        b1 = jax.random.normal(ks[1], (C,), jnp.float32) * 0.1
        w2 = jax.random.normal(ks[2], (C, C, K), jnp.float32) * 0.05
        b2 = jax.random.normal(ks[3], (C,), jnp.float32) * 0.1
        g1 = 1.0 + 0.1 * jax.random.normal(ks[4], (C,), jnp.float32)
        be1 = 0.1 * jax.random.normal(ks[5], (C,), jnp.float32)
        m1 = 0.1 * jax.random.normal(ks[6], (C,), jnp.float32)
        v1 = 1.0 + 0.1 * jax.nn.softplus(jax.random.normal(ks[7], (C,), jnp.float32))
        g2 = jnp.ones((C,), jnp.float32)
        be2 = jnp.zeros((C,), jnp.float32)
        m2 = 0.05 * jax.random.normal(ks[8], (C,), jnp.float32)
        v2 = 1.0 + 0.1 * jax.nn.softplus(jax.random.normal(ks[9], (C,), jnp.float32))
        return (w1, b1, g1, be1, m1, v1, w2, b2, g2, be2, m2, v2)

    key = jax.random.PRNGKey(0)
    kx, kp = jax.random.split(key)
    params = make_params(kp)

    fwd = jax.jit(functools.partial(cnn_forward, kernel_size=K))

    # B=2  -> Bb=1, grid=2 (16-lane tiles)
    # B=16 -> Bb=8, grid=2 (full 128-lane-dense tiles, both v7x cores busy)
    for B in (2, 16):
        x = jax.random.normal(jax.random.fold_in(kx, B), (B, C, L), jnp.float32)
        out = jax.block_until_ready(fwd(x, *params))
        ref = cnn_reference(x, *params)
        assert out.shape == (B, C, L)
        err = float(jnp.max(jnp.abs(out - ref)))
        # bf16 matmul operands with the BN scale folded into the weights
        # (f32 accumulation) => loosened tolerance vs the f32 reference.
        assert jnp.allclose(out, ref, rtol=3e-2, atol=3e-2), err

    print("KERNEL_OK")
</pallas_src>

<mosaic_0001>
module attributes {stable_mosaic.version = 11 : i64} {
  func.func @_cnn_kernel(%arg0: i32, %arg1: memref<1x32x16xf32, #tpu.memory_space<vmem>>, %arg2: memref<32x288xbf16, #tpu.memory_space<vmem>>, %arg3: memref<32x288xbf16, #tpu.memory_space<vmem>>, %arg4: memref<32x1xf32, #tpu.memory_space<vmem>>, %arg5: memref<32x1xf32, #tpu.memory_space<vmem>>, %arg6: memref<1x32x16xf32, #tpu.memory_space<vmem>>) attributes {dimension_semantics = [#tpu.dimension_semantics<parallel>], iteration_bounds = array<i64: 2>, scalar_prefetch = 0 : i64, scratch_operands = 0 : i64, tpu.core_type = #tpu.core_type<tc>, window_params = [{transform_indices = @transform_0, window_bounds = array<i64: 1, 32, 16>}, {pipeline_mode = #tpu.pipeline_mode<synchronous>, transform_indices = @transform_1, window_bounds = array<i64: 32, 288>}, {pipeline_mode = #tpu.pipeline_mode<synchronous>, transform_indices = @transform_2, window_bounds = array<i64: 32, 288>}, {pipeline_mode = #tpu.pipeline_mode<synchronous>, transform_indices = @transform_3, window_bounds = array<i64: 32, 1>}, {pipeline_mode = #tpu.pipeline_mode<synchronous>, transform_indices = @transform_4, window_bounds = array<i64: 32, 1>}, {transform_indices = @transform_5, window_bounds = array<i64: 1, 32, 16>}]} {
    %c0 = arith.constant 0 : index
    %c0_0 = arith.constant 0 : index
    %0 = vector.load %arg2[%c0, %c0_0] : memref<32x288xbf16, #tpu.memory_space<vmem>>, vector<32x288xbf16>
    %c0_1 = arith.constant 0 : index
    %c0_2 = arith.constant 0 : index
    %1 = vector.load %arg3[%c0_1, %c0_2] : memref<32x288xbf16, #tpu.memory_space<vmem>>, vector<32x288xbf16>
    %c0_3 = arith.constant 0 : index
    %c0_4 = arith.constant 0 : index
    %2 = vector.load %arg4[%c0_3, %c0_4] : memref<32x1xf32, #tpu.memory_space<vmem>>, vector<32x1xf32>
    %c0_5 = arith.constant 0 : index
    %c0_6 = arith.constant 0 : index
    %3 = vector.load %arg5[%c0_5, %c0_6] : memref<32x1xf32, #tpu.memory_space<vmem>>, vector<32x1xf32>
    %c0_7 = arith.constant 0 : index
    %c0_8 = arith.constant 0 : index
    %c0_9 = arith.constant 0 : index
    %4 = vector.load %arg1[%c0_7, %c0_8, %c0_9] : memref<1x32x16xf32, #tpu.memory_space<vmem>>, vector<1x32x16xf32>
    %5 = vector.shape_cast %4 : vector<1x32x16xf32> to vector<32x16xf32>
    %6 = arith.truncf %5 : vector<32x16xf32> to vector<32x16xbf16>
    %7 = tpu.iota {dimensions = array<i32: 1>} : vector<1x16xi32>
    %cst = arith.constant 0.000000e+00 : bf16
    %8 = vector.broadcast %cst : bf16 to vector<32x4xbf16>
    %9 = tpu.concatenate %8, %6, %8 in 1 : vector<32x4xbf16>, vector<32x16xbf16>, vector<32x4xbf16> -> vector<32x24xbf16>
    %10 = vector.extract_strided_slice %9 {offsets = [0, 0], sizes = [32, 16], strides = [1, 1]} : vector<32x24xbf16> to vector<32x16xbf16>
    %c4_i32 = arith.constant 4 : i32
    %11 = vector.broadcast %c4_i32 : i32 to vector<1x16xi32>
    %12 = arith.cmpi sge, %7, %11 : vector<1x16xi32>
    %c0_i32 = arith.constant 0 : i32
    %13 = arith.sitofp %c0_i32 : i32 to bf16
    %14 = vector.shape_cast %12 : vector<1x16xi1> to vector<1x16xi1>
    %15 = vector.broadcast %14 : vector<1x16xi1> to vector<32x16xi1>
    %16 = vector.broadcast %13 : bf16 to vector<32x16xbf16>
    %17 = arith.select %15, %10, %16 : vector<32x16xi1>, vector<32x16xbf16>
    %18 = vector.extract_strided_slice %9 {offsets = [0, 1], sizes = [32, 16], strides = [1, 1]} : vector<32x24xbf16> to vector<32x16xbf16>
    %c3_i32 = arith.constant 3 : i32
    %19 = vector.broadcast %c3_i32 : i32 to vector<1x16xi32>
    %20 = arith.cmpi sge, %7, %19 : vector<1x16xi32>
    %c0_i32_10 = arith.constant 0 : i32
    %21 = arith.sitofp %c0_i32_10 : i32 to bf16
    %22 = vector.shape_cast %20 : vector<1x16xi1> to vector<1x16xi1>
    %23 = vector.broadcast %22 : vector<1x16xi1> to vector<32x16xi1>
    %24 = vector.broadcast %21 : bf16 to vector<32x16xbf16>
    %25 = arith.select %23, %18, %24 : vector<32x16xi1>, vector<32x16xbf16>
    %26 = vector.extract_strided_slice %9 {offsets = [0, 2], sizes = [32, 16], strides = [1, 1]} : vector<32x24xbf16> to vector<32x16xbf16>
    %c2_i32 = arith.constant 2 : i32
    %27 = vector.broadcast %c2_i32 : i32 to vector<1x16xi32>
    %28 = arith.cmpi sge, %7, %27 : vector<1x16xi32>
    %c0_i32_11 = arith.constant 0 : i32
    %29 = arith.sitofp %c0_i32_11 : i32 to bf16
    %30 = vector.shape_cast %28 : vector<1x16xi1> to vector<1x16xi1>
    %31 = vector.broadcast %30 : vector<1x16xi1> to vector<32x16xi1>
    %32 = vector.broadcast %29 : bf16 to vector<32x16xbf16>
    %33 = arith.select %31, %26, %32 : vector<32x16xi1>, vector<32x16xbf16>
    %34 = vector.extract_strided_slice %9 {offsets = [0, 3], sizes = [32, 16], strides = [1, 1]} : vector<32x24xbf16> to vector<32x16xbf16>
    %c1_i32 = arith.constant 1 : i32
    %35 = vector.broadcast %c1_i32 : i32 to vector<1x16xi32>
    %36 = arith.cmpi sge, %7, %35 : vector<1x16xi32>
    %c0_i32_12 = arith.constant 0 : i32
    %37 = arith.sitofp %c0_i32_12 : i32 to bf16
    %38 = vector.shape_cast %36 : vector<1x16xi1> to vector<1x16xi1>
    %39 = vector.broadcast %38 : vector<1x16xi1> to vector<32x16xi1>
    %40 = vector.broadcast %37 : bf16 to vector<32x16xbf16>
    %41 = arith.select %39, %34, %40 : vector<32x16xi1>, vector<32x16xbf16>
    %42 = vector.extract_strided_slice %9 {offsets = [0, 4], sizes = [32, 16], strides = [1, 1]} : vector<32x24xbf16> to vector<32x16xbf16>
    %43 = vector.extract_strided_slice %9 {offsets = [0, 5], sizes = [32, 16], strides = [1, 1]} : vector<32x24xbf16> to vector<32x16xbf16>
    %c15_i32 = arith.constant 15 : i32
    %44 = vector.broadcast %c15_i32 : i32 to vector<1x16xi32>
    %45 = arith.cmpi slt, %7, %44 : vector<1x16xi32>
    %c0_i32_13 = arith.constant 0 : i32
    %46 = arith.sitofp %c0_i32_13 : i32 to bf16
    %47 = vector.shape_cast %45 : vector<1x16xi1> to vector<1x16xi1>
    %48 = vector.broadcast %47 : vector<1x16xi1> to vector<32x16xi1>
    %49 = vector.broadcast %46 : bf16 to vector<32x16xbf16>
    %50 = arith.select %48, %43, %49 : vector<32x16xi1>, vector<32x16xbf16>
    %51 = vector.extract_strided_slice %9 {offsets = [0, 6], sizes = [32, 16], strides = [1, 1]} : vector<32x24xbf16> to vector<32x16xbf16>
    %c14_i32 = arith.constant 14 : i32
    %52 = vector.broadcast %c14_i32 : i32 to vector<1x16xi32>
    %53 = arith.cmpi slt, %7, %52 : vector<1x16xi32>
    %c0_i32_14 = arith.constant 0 : i32
    %54 = arith.sitofp %c0_i32_14 : i32 to bf16
    %55 = vector.shape_cast %53 : vector<1x16xi1> to vector<1x16xi1>
    %56 = vector.broadcast %55 : vector<1x16xi1> to vector<32x16xi1>
    %57 = vector.broadcast %54 : bf16 to vector<32x16xbf16>
    %58 = arith.select %56, %51, %57 : vector<32x16xi1>, vector<32x16xbf16>
    %59 = vector.extract_strided_slice %9 {offsets = [0, 7], sizes = [32, 16], strides = [1, 1]} : vector<32x24xbf16> to vector<32x16xbf16>
    %c13_i32 = arith.constant 13 : i32
    %60 = vector.broadcast %c13_i32 : i32 to vector<1x16xi32>
    %61 = arith.cmpi slt, %7, %60 : vector<1x16xi32>
    %c0_i32_15 = arith.constant 0 : i32
    %62 = arith.sitofp %c0_i32_15 : i32 to bf16
    %63 = vector.shape_cast %61 : vector<1x16xi1> to vector<1x16xi1>
    %64 = vector.broadcast %63 : vector<1x16xi1> to vector<32x16xi1>
    %65 = vector.broadcast %62 : bf16 to vector<32x16xbf16>
    %66 = arith.select %64, %59, %65 : vector<32x16xi1>, vector<32x16xbf16>
    %67 = vector.extract_strided_slice %9 {offsets = [0, 8], sizes = [32, 16], strides = [1, 1]} : vector<32x24xbf16> to vector<32x16xbf16>
    %c12_i32 = arith.constant 12 : i32
    %68 = vector.broadcast %c12_i32 : i32 to vector<1x16xi32>
    %69 = arith.cmpi slt, %7, %68 : vector<1x16xi32>
    %c0_i32_16 = arith.constant 0 : i32
    %70 = arith.sitofp %c0_i32_16 : i32 to bf16
    %71 = vector.shape_cast %69 : vector<1x16xi1> to vector<1x16xi1>
    %72 = vector.broadcast %71 : vector<1x16xi1> to vector<32x16xi1>
    %73 = vector.broadcast %70 : bf16 to vector<32x16xbf16>
    %74 = arith.select %72, %67, %73 : vector<32x16xi1>, vector<32x16xbf16>
    %75 = tpu.concatenate %17, %25, %33, %41, %42, %50, %58, %66, %74 in 0 : vector<32x16xbf16>, vector<32x16xbf16>, vector<32x16xbf16>, vector<32x16xbf16>, vector<32x16xbf16>, vector<32x16xbf16>, vector<32x16xbf16>, vector<32x16xbf16>, vector<32x16xbf16> -> vector<288x16xbf16>
    %cst_17 = arith.constant dense<0.000000e+00> : vector<32x16xf32>
    %76 = tpu.matmul %0, %75, %cst_17 {dimension_numbers = #tpu.dot_dimension_numbers<[1], [0], [0], [1], [0, 0, 1, 1], [], []>} : vector<32x288xbf16>, vector<288x16xbf16>, vector<32x16xf32> -> vector<32x16xf32>
    %77 = vector.broadcast %2 : vector<32x1xf32> to vector<32x16xf32>
    %78 = arith.addf %76, %77 : vector<32x16xf32>
    %cst_18 = arith.constant 0.000000e+00 : f32
    %79 = vector.broadcast %cst_18 : f32 to vector<32x16xf32>
    %80 = arith.maximumf %78, %79 : vector<32x16xf32>
    %81 = arith.truncf %80 : vector<32x16xf32> to vector<32x16xbf16>
    %cst_19 = arith.constant 0.000000e+00 : bf16
    %82 = vector.broadcast %cst_19 : bf16 to vector<32x4xbf16>
    %83 = tpu.concatenate %82, %81, %82 in 1 : vector<32x4xbf16>, vector<32x16xbf16>, vector<32x4xbf16> -> vector<32x24xbf16>
    %84 = vector.extract_strided_slice %83 {offsets = [0, 0], sizes = [32, 16], strides = [1, 1]} : vector<32x24xbf16> to vector<32x16xbf16>
    %c4_i32_20 = arith.constant 4 : i32
    %85 = vector.broadcast %c4_i32_20 : i32 to vector<1x16xi32>
    %86 = arith.cmpi sge, %7, %85 : vector<1x16xi32>
    %c0_i32_21 = arith.constant 0 : i32
    %87 = arith.sitofp %c0_i32_21 : i32 to bf16
    %88 = vector.shape_cast %86 : vector<1x16xi1> to vector<1x16xi1>
    %89 = vector.broadcast %88 : vector<1x16xi1> to vector<32x16xi1>
    %90 = vector.broadcast %87 : bf16 to vector<32x16xbf16>
    %91 = arith.select %89, %84, %90 : vector<32x16xi1>, vector<32x16xbf16>
    %92 = vector.extract_strided_slice %83 {offsets = [0, 1], sizes = [32, 16], strides = [1, 1]} : vector<32x24xbf16> to vector<32x16xbf16>
    %c3_i32_22 = arith.constant 3 : i32
    %93 = vector.broadcast %c3_i32_22 : i32 to vector<1x16xi32>
    %94 = arith.cmpi sge, %7, %93 : vector<1x16xi32>
    %c0_i32_23 = arith.constant 0 : i32
    %95 = arith.sitofp %c0_i32_23 : i32 to bf16
    %96 = vector.shape_cast %94 : vector<1x16xi1> to vector<1x16xi1>
    %97 = vector.broadcast %96 : vector<1x16xi1> to vector<32x16xi1>
    %98 = vector.broadcast %95 : bf16 to vector<32x16xbf16>
    %99 = arith.select %97, %92, %98 : vector<32x16xi1>, vector<32x16xbf16>
    %100 = vector.extract_strided_slice %83 {offsets = [0, 2], sizes = [32, 16], strides = [1, 1]} : vector<32x24xbf16> to vector<32x16xbf16>
    %c2_i32_24 = arith.constant 2 : i32
    %101 = vector.broadcast %c2_i32_24 : i32 to vector<1x16xi32>
    %102 = arith.cmpi sge, %7, %101 : vector<1x16xi32>
    %c0_i32_25 = arith.constant 0 : i32
    %103 = arith.sitofp %c0_i32_25 : i32 to bf16
    %104 = vector.shape_cast %102 : vector<1x16xi1> to vector<1x16xi1>
    %105 = vector.broadcast %104 : vector<1x16xi1> to vector<32x16xi1>
    %106 = vector.broadcast %103 : bf16 to vector<32x16xbf16>
    %107 = arith.select %105, %100, %106 : vector<32x16xi1>, vector<32x16xbf16>
    %108 = vector.extract_strided_slice %83 {offsets = [0, 3], sizes = [32, 16], strides = [1, 1]} : vector<32x24xbf16> to vector<32x16xbf16>
    %c1_i32_26 = arith.constant 1 : i32
    %109 = vector.broadcast %c1_i32_26 : i32 to vector<1x16xi32>
    %110 = arith.cmpi sge, %7, %109 : vector<1x16xi32>
    %c0_i32_27 = arith.constant 0 : i32
    %111 = arith.sitofp %c0_i32_27 : i32 to bf16
    %112 = vector.shape_cast %110 : vector<1x16xi1> to vector<1x16xi1>
    %113 = vector.broadcast %112 : vector<1x16xi1> to vector<32x16xi1>
    %114 = vector.broadcast %111 : bf16 to vector<32x16xbf16>
    %115 = arith.select %113, %108, %114 : vector<32x16xi1>, vector<32x16xbf16>
    %116 = vector.extract_strided_slice %83 {offsets = [0, 4], sizes = [32, 16], strides = [1, 1]} : vector<32x24xbf16> to vector<32x16xbf16>
    %117 = vector.extract_strided_slice %83 {offsets = [0, 5], sizes = [32, 16], strides = [1, 1]} : vector<32x24xbf16> to vector<32x16xbf16>
    %c15_i32_28 = arith.constant 15 : i32
    %118 = vector.broadcast %c15_i32_28 : i32 to vector<1x16xi32>
    %119 = arith.cmpi slt, %7, %118 : vector<1x16xi32>
    %c0_i32_29 = arith.constant 0 : i32
    %120 = arith.sitofp %c0_i32_29 : i32 to bf16
    %121 = vector.shape_cast %119 : vector<1x16xi1> to vector<1x16xi1>
    %122 = vector.broadcast %121 : vector<1x16xi1> to vector<32x16xi1>
    %123 = vector.broadcast %120 : bf16 to vector<32x16xbf16>
    %124 = arith.select %122, %117, %123 : vector<32x16xi1>, vector<32x16xbf16>
    %125 = vector.extract_strided_slice %83 {offsets = [0, 6], sizes = [32, 16], strides = [1, 1]} : vector<32x24xbf16> to vector<32x16xbf16>
    %c14_i32_30 = arith.constant 14 : i32
    %126 = vector.broadcast %c14_i32_30 : i32 to vector<1x16xi32>
    %127 = arith.cmpi slt, %7, %126 : vector<1x16xi32>
    %c0_i32_31 = arith.constant 0 : i32
    %128 = arith.sitofp %c0_i32_31 : i32 to bf16
    %129 = vector.shape_cast %127 : vector<1x16xi1> to vector<1x16xi1>
    %130 = vector.broadcast %129 : vector<1x16xi1> to vector<32x16xi1>
    %131 = vector.broadcast %128 : bf16 to vector<32x16xbf16>
    %132 = arith.select %130, %125, %131 : vector<32x16xi1>, vector<32x16xbf16>
    %133 = vector.extract_strided_slice %83 {offsets = [0, 7], sizes = [32, 16], strides = [1, 1]} : vector<32x24xbf16> to vector<32x16xbf16>
    %c13_i32_32 = arith.constant 13 : i32
    %134 = vector.broadcast %c13_i32_32 : i32 to vector<1x16xi32>
    %135 = arith.cmpi slt, %7, %134 : vector<1x16xi32>
    %c0_i32_33 = arith.constant 0 : i32
    %136 = arith.sitofp %c0_i32_33 : i32 to bf16
    %137 = vector.shape_cast %135 : vector<1x16xi1> to vector<1x16xi1>
    %138 = vector.broadcast %137 : vector<1x16xi1> to vector<32x16xi1>
    %139 = vector.broadcast %136 : bf16 to vector<32x16xbf16>
    %140 = arith.select %138, %133, %139 : vector<32x16xi1>, vector<32x16xbf16>
    %141 = vector.extract_strided_slice %83 {offsets = [0, 8], sizes = [32, 16], strides = [1, 1]} : vector<32x24xbf16> to vector<32x16xbf16>
    %c12_i32_34 = arith.constant 12 : i32
    %142 = vector.broadcast %c12_i32_34 : i32 to vector<1x16xi32>
    %143 = arith.cmpi slt, %7, %142 : vector<1x16xi32>
    %c0_i32_35 = arith.constant 0 : i32
    %144 = arith.sitofp %c0_i32_35 : i32 to bf16
    %145 = vector.shape_cast %143 : vector<1x16xi1> to vector<1x16xi1>
    %146 = vector.broadcast %145 : vector<1x16xi1> to vector<32x16xi1>
    %147 = vector.broadcast %144 : bf16 to vector<32x16xbf16>
    %148 = arith.select %146, %141, %147 : vector<32x16xi1>, vector<32x16xbf16>
    %149 = tpu.concatenate %91, %99, %107, %115, %116, %124, %132, %140, %148 in 0 : vector<32x16xbf16>, vector<32x16xbf16>, vector<32x16xbf16>, vector<32x16xbf16>, vector<32x16xbf16>, vector<32x16xbf16>, vector<32x16xbf16>, vector<32x16xbf16>, vector<32x16xbf16> -> vector<288x16xbf16>
    %cst_36 = arith.constant dense<0.000000e+00> : vector<32x16xf32>
    %150 = tpu.matmul %1, %149, %cst_36 {dimension_numbers = #tpu.dot_dimension_numbers<[1], [0], [0], [1], [0, 0, 1, 1], [], []>} : vector<32x288xbf16>, vector<288x16xbf16>, vector<32x16xf32> -> vector<32x16xf32>
    %151 = vector.broadcast %3 : vector<32x1xf32> to vector<32x16xf32>
    %152 = arith.addf %150, %151 : vector<32x16xf32>
    %cst_37 = arith.constant 0.000000e+00 : f32
    %153 = vector.broadcast %cst_37 : f32 to vector<32x16xf32>
    %154 = arith.maximumf %152, %153 : vector<32x16xf32>
    %155 = arith.addf %154, %5 : vector<32x16xf32>
    %c0_38 = arith.constant 0 : index
    %c0_39 = arith.constant 0 : index
    %c0_40 = arith.constant 0 : index
    %156 = vector.load %arg6[%c0_38, %c0_39, %c0_40] : memref<1x32x16xf32, #tpu.memory_space<vmem>>, vector<1x32x16xf32>
    %157 = vector.shape_cast %156 : vector<1x32x16xf32> to vector<32x16xf32>
    %158 = vector.shape_cast %155 : vector<32x16xf32> to vector<1x32x16xf32>
    tpu.vector_store %arg6[%c0_38, %c0_39, %c0_40], %158 {strides = array<i32>} : memref<1x32x16xf32, #tpu.memory_space<vmem>>, vector<1x32x16xf32>,
    return
  }
  func.func @transform_0(%arg0: i32) -> (i32, i32, i32) {
    %c0_i32 = arith.constant 0 : i32
    %c0_i32_0 = arith.constant 0 : i32
    %c0_i32_1 = arith.constant 0 : i32
    return %arg0, %c0_i32, %c0_i32_0 : i32, i32, i32
  }
  func.func @transform_1(%arg0: i32) -> (i32, i32) {
    %c0_i32 = arith.constant 0 : i32
    %c0_i32_0 = arith.constant 0 : i32
    %c0_i32_1 = arith.constant 0 : i32
    return %c0_i32, %c0_i32_0 : i32, i32
  }
  func.func @transform_2(%arg0: i32) -> (i32, i32) {
    %c0_i32 = arith.constant 0 : i32
    %c0_i32_0 = arith.constant 0 : i32
    %c0_i32_1 = arith.constant 0 : i32
    return %c0_i32, %c0_i32_0 : i32, i32
  }
  func.func @transform_3(%arg0: i32) -> (i32, i32) {
    %c0_i32 = arith.constant 0 : i32
    %c0_i32_0 = arith.constant 0 : i32
    %c0_i32_1 = arith.constant 0 : i32
    return %c0_i32, %c0_i32_0 : i32, i32
  }
  func.func @transform_4(%arg0: i32) -> (i32, i32) {
    %c0_i32 = arith.constant 0 : i32
    %c0_i32_0 = arith.constant 0 : i32
    %c0_i32_1 = arith.constant 0 : i32
    return %c0_i32, %c0_i32_0 : i32, i32
  }
  func.func @transform_5(%arg0: i32) -> (i32, i32, i32) {
    %c0_i32 = arith.constant 0 : i32
    %c0_i32_0 = arith.constant 0 : i32
    %c0_i32_1 = arith.constant 0 : i32
    return %arg0, %c0_i32, %c0_i32_0 : i32, i32, i32
  }
}

</mosaic_0001>

<bundles_post_ra>
// kernel: cnn_forward.1
= control target key start
LH: loop header
LB: loop body
LE: loop exit
PB: predicated region body
PF: predicated region fallthrough
CT: control target
= control target key end

     0   :  { %s1135_s18 = smov 0   ;;  %s1414_s0 = inlined_call_operand.vmem [shape: f32[2,32,16], index: 0, kind: input, shape index: {}]   ;;  %s1415_s1 = inlined_call_operand.vmem [shape: bf16[32,288], index: 1, kind: input, shape index: {}]   ;;  %s1416_s2 = inlined_call_operand.vmem [shape: bf16[32,288], index: 2, kind: input, shape index: {}]   ;;  %s1417_s3 = inlined_call_operand.vmem [shape: f32[32,1], index: 3, kind: input, shape index: {}]   ;;  %s1418_s4 = inlined_call_operand.vmem [shape: f32[32,1], index: 4, kind: input, shape index: {}]   ;;  %s1419_s5 = inlined_call_operand.vmem [shape: f32[2,32,16], index: 5, kind: output, shape index: {}]  }
   0x1 LB: > { %s928_s19 = sadd.s32 4294967295, %s1086_s18   ;;  %p932_p0 = scmp.ge.s32.totalorder %s1086_s18, 1  ;;  %s1086_s18 = sphi %s1135_s18, %s15_s18  }
   0x2   : > { %p187_p1 = scmp.lt.s32.totalorder %s1086_s18, 3 }
   0x4   : > { %p188_p2 = pnand %p932_p0, %p187_p1 }
   0x5   : > { %v258_v0 = vlaneseq (!%p188_p2)  ;;  %p215_p3 = scmp.lt.s32.totalorder (!%p188_p2), %s928_s19, 1  ;;  %v1088_v1 = vmov (!%p188_p2), 0   ;;  %s1089_s24 = smov (!%p188_p2), 5   ;;  %v1066_v45 = vld [vmem:[%s1415_s1 + $0x4] ss:$12 sps:$4 sm:$0xff] (!%p188_p2)   ;;  %v245_v58 = vld [vmem:[%s1417_s3 + $0x8] sm:$0xff] (!%p188_p2) }
   0x6   : > { %191 = sbr.rel (%p188_p2) target bundleno = 1010 (0x3f2), region = 40  ;;  %1062 = vset.pattern.permute.xlu1 (!%p188_p2), %v1088_v1  ;;  %1063 = vset.pattern.permute.xlu0 (!%p188_p2), %v1088_v1  ;;  %s1090_s25 = smov (!%p188_p2), 4   ;;  %v1067_v49 = vld [vmem:[%s1415_s1 + $0x8] ss:$12 sps:$4 sm:$0xff] (!%p188_p2)   ;;  %v244_v55 = vld [vmem:[%s1417_s3] sm:$0xff] (!%p188_p2)  ;;  %v247_v59 = vld [vmem:[%s1417_s3 + $0x18] sm:$0xff] (!%p188_p2) }
   0x7   : > { %v259_v2 = vand.u32 (!%p188_p2), 127, %v258_v0  ;;  %v283_v3 = vshrl.u32 (!%p188_p2), %v258_v0, 7  ;;  %s1091_s26 = smov (!%p188_p2), 1   ;;  %s1092_s27 = smov (!%p188_p2), 2   ;;  %540 = vmatprep.mubr.bf16.mxu0 (!%p188_p2), %v1066_v45  ;;  %v246_v57 = vld [vmem:[%s1417_s3 + $0x10] sm:$0xff] (!%p188_p2) }
   0x8   : > { %s1093_s28 = smov (!%p188_p2), 6   ;;  %s1094_s29 = smov (!%p188_p2), 3  }
   0x9   : > { %v1145_v4 = vsub.s32 (!%p188_p2), 0, %v283_v3  ;;  %vm331_vm0 = vcmp.lt.s32.totalorder (!%p188_p2), %v259_v2, 15  ;;  %vm289_vm1 = vcmp.ge.s32.totalorder (!%p188_p2), %v259_v2, 3  ;;  %vm303_vm2 = vcmp.ge.s32.totalorder (!%p188_p2), %v259_v2, 2  ;;  %s1095_s30 = smov (!%p188_p2), 7   ;;  %s1096_s6 = smov (!%p188_p2), 8  }
   0xa   : > { %vm334_vm3 = vmpackc.low (!%p188_p2), %vm331_vm0, %vm331_vm0  ;;  %vm345_vm4 = vcmp.lt.s32.totalorder (!%p188_p2), %v259_v2, 14  ;;  %vm317_vm7 = vcmp.ge.s32.totalorder (!%p188_p2), %v259_v2, 1  ;;  %vm359_vm9 = vcmp.lt.s32.totalorder (!%p188_p2), %v259_v2, 13  ;;  %vm277_vm10 = vcmp.ge.s32.totalorder (!%p188_p2), %v259_v2, 4  ;;  %s1097_s7 = smov (!%p188_p2), 124   ;;  %s1098_s8 = smov (!%p188_p2), 123  }
   0xb   : > { %v335_v5 = vsel (!%p188_p2), %vm334_vm3, 65537, %v1088_v1  ;;  %vm292_vm5 = vmpackc.low (!%p188_p2), %vm289_vm1, %vm289_vm1  ;;  %vm373_vm13 = vcmp.lt.s32.totalorder (!%p188_p2), %v259_v2, 12  ;;  %vm266_vm0 = vcmask (!%p188_p2), 31744   ;;  %vm272_vm1 = vcmask (!%p188_p2), 162816   ;;  %s1099_s9 = smov (!%p188_p2), 127   ;;  %s1100_s10 = smov (!%p188_p2), 122  }
   0xc   : > { %v339_v8 = vrot.slane (!%p188_p2), %v335_v5, %v1145_v4  ;;  %v293_v10 = vsel (!%p188_p2), %vm292_vm5, 65537, %v1088_v1  ;;  %vm306_vm6 = vmpackc.low (!%p188_p2), %vm303_vm2, %vm303_vm2  ;;  %s1101_s11 = smov (!%p188_p2), 126   ;;  %s1102_s14 = smov (!%p188_p2), 121  }
   0xd   : > { %s1423_s19 = smov (!%p215_p3, %s928_s19), 1  ;;  %vm348_vm8 = vmpackc.low %vm345_vm4, %vm345_vm4  ;;  %v297_v13 = vrot.slane %v293_v10, %v1145_v4  ;;  %v307_v15 = vsel %vm306_vm6, 65537, %v1088_v1  ;;  %s1103_s17 = smov 125  }
   0xe   : > { %s955_s20 = sshll.u32 %s1423_s19, 5  ;;  %340 = vrot.lane.b32.xlu1 %v339_v8, %s1089_s24  ;;  %v349_v16 = vsel %vm348_vm8, 65537, %v1088_v1  ;;  %vm320_vm11 = vmpackc.low %vm317_vm7, %vm317_vm7  ;;  %v311_v17 = vrot.slane %v307_v15, %v1145_v4  ;;  %vm501_vm8 = vcmask 261120   ;;  %s1104_s21 = smov 120  }
   0xf   : > { %s219_s23 = scalar_lea.vmem %s1414_s0, %s955_s20  ;;  %vm362_vm12 = vmpackc.low %vm359_vm9, %vm359_vm9  ;;  %v353_v18 = vrot.slane %v349_v16, %v1145_v4  ;;  %v321_v20 = vsel %vm320_vm11, 65537, %v1088_v1  ;;  %1025 = vmatprep.mubr.msk.bf16.mxu1 %vm501_vm8, %v1067_v49  ;;  %vm868_vm11 = vcmask 130048  }
  0x10   : > { %v1153_v6 = vld [vmem:[%s219_s23] sm:$0xff]  ;;  %v1155_v7 = vld [vmem:[%s219_s23 + $0x8] sm:$0xff]  ;;  %v1160_v11 = vld [vmem:[%s219_s23 + $0x10] sm:$0xff]  ;;  %v363_v21 = vsel %vm362_vm12, 65537, %v1088_v1  ;;  %v325_v23 = vrot.slane %v321_v20, %v1145_v4 }
  0x11   : > { %v256_v9 = vpack.c.bf16 %v1155_v7, %v1153_v6  ;;  %v1162_v12 = vld [vmem:[%s219_s23 + $0x18] sm:$0xff]  ;;  %vm280_vm14 = vmpackc.low %vm277_vm10, %vm277_vm10  ;;  %v367_v24 = vrot.slane %v363_v21, %v1145_v4  ;;  %v1068_v21 = vld [vmem:[%s1415_s1 + $0x20] ss:$12 sps:$4 sm:$0xff]  }
  0x12   : > { %v257_v14 = vpack.c.bf16 %v1162_v12, %v1160_v11  ;;  %298 = vrot.lane.b32.xlu1 %v297_v13, %s1091_s26  ;;  %v1171_v19 = vsel %vm280_vm14, 65537, %v1088_v1  ;;  %vm376_vm15 = vmpackc.low %vm373_vm13, %vm373_vm13 }
  0x13   : > { %262 = vrot.lane.b32.xlu0 %v256_v9, %s1090_s25  ;;  %v285_v22 = vrot.slane %v1171_v19, %v1145_v4  ;;  %v377_v25 = vsel %vm376_vm15, 65537, %v1088_v1  ;;  %v1069_v19 = vld [vmem:[%s1415_s1 + $0x1c] ss:$12 sps:$4 sm:$0xff]  }
  0x14   : > { %v381_v26 = vrot.slane %v377_v25, %v1145_v4 }
  0x15   : > { %vm1289_vm10 = vcmp.ne.s16.totalorder %v285_v22, 0  ;;  %v1071_v22 = vld [vmem:[%s1415_s1 + $0x18] ss:$12 sps:$4 sm:$0xff]  }
  0x16   : > { %312 = vrot.lane.b32.xlu1 %v311_v17, %s1092_s27 }
  0x17   : > { %264 = vrot.lane.b32.xlu0 %v257_v14, %s1090_s25 }
  0x1a   : > { %326 = vrot.lane.b32.xlu1 %v325_v23, %s1094_s29 }
  0x1b   : > { %354 = vrot.lane.b32.xlu0 %v353_v18, %s1093_s28  ;;  %v1064_v18 = vld [vmem:[%s1415_s1] ss:$12 sps:$4 sm:$0xff]  }
  0x1f   : > { %368 = vrot.lane.b32.xlu0 %v367_v24, %s1095_s30 }
  0x23   : > { %382 = vrot.lane.b32.xlu0 %v381_v26, %s1096_s6 }
  0x80   : > { %v1178_v27 = vpop.permute.xlu1 %340 }
  0x81   : > { %vm342_vm2 = vcmp.ne.s16.totalorder %v1178_v27, 0 }
  0x84   : > { %v1187_v31 = vpop.permute.xlu1 %298 }
  0x85   : > { %v263_v28 = vpop.permute.xlu0 %262  ;;  %vm300_vm3 = vcmp.ne.s16.totalorder %v1187_v31, 0  ;;  %v1074_v31 = vld [vmem:[%s1416_s2 + $0x4] ss:$12 sps:$4 sm:$0xff]  }
  0x86   : > { %v269_v29 = vsel %vm266_vm0, 0, %v263_v28 }
  0x87   : > { %v1182_v30 = vsel %vm272_vm1, %v269_v29, 0 }
  0x88   : > { %413 = vrot.lane.b32.xlu1 %v1182_v30, %s1097_s7  ;;  %v343_v35 = vsel %vm342_vm2, %v1182_v30, 0  ;;  %v301_v37 = vsel %vm300_vm3, %v1182_v30, 0  ;;  %v1211_v39 = vpop.permute.xlu1 %312  ;;  %v287_v62 = vsel %vm1289_vm10, %v1182_v30, 0 }
  0x89   : > { %v265_v32 = vpop.permute.xlu0 %264  ;;  %vm314_vm5 = vcmp.ne.s16.totalorder %v1211_v39, 0 }
  0x8a   : > { %v271_v33 = vsel %vm266_vm0, 0, %v265_v32  ;;  %v315_v43 = vsel %vm314_vm5, %v1182_v30, 0 }
  0x8b   : > { %v1191_v34 = vsel %vm272_vm1, %v271_v33, 0 }
  0x8c   : > { %421 = vrot.lane.b32.xlu1 %v343_v35, %s1098_s8  ;;  %415 = vrot.lane.b32.xlu0 %v1191_v34, %s1097_s7  ;;  %v344_v38 = vsel %vm342_vm2, %v1191_v34, 0  ;;  %v302_v40 = vsel %vm300_vm3, %v1191_v34, 0  ;;  %v1236_v46 = vpop.permute.xlu1 %326  ;;  %v316_v47 = vsel %vm314_vm5, %v1191_v34, 0  ;;  %v288_v1 = vsel %vm1289_vm10, %v1191_v34, 0 }
  0x8d   : > { %v1200_v36 = vpop.permute.xlu0 %354  ;;  %vm328_vm7 = vcmp.ne.s16.totalorder %v1236_v46, 0  ;;  %v251_v46 = vld [vmem:[%s1418_s4 + $0x18] sm:$0xff] }
  0x8e   : > { %vm356_vm4 = vcmp.ne.s16.totalorder %v1200_v36, 0  ;;  %v329_v51 = vsel %vm328_vm7, %v1182_v30, 0  ;;  %v330_v53 = vsel %vm328_vm7, %v1191_v34, 0 }
  0x8f   : > { %v357_v41 = vsel %vm356_vm4, %v1182_v30, 0  ;;  %v358_v44 = vsel %vm356_vm4, %v1191_v34, 0 }
  0x90   : > { %389 = vrot.lane.b32.xlu0 %v301_v37, %s1099_s9  ;;  %423 = vrot.lane.b32.xlu1 %v344_v38, %s1098_s8 }
  0x91   : > { %v1222_v42 = vpop.permute.xlu0 %368 }
  0x92   : > { %vm370_vm6 = vcmp.ne.s16.totalorder %v1222_v42, 0  ;;  %v248_v42 = vld [vmem:[%s1418_s4] sm:$0xff] }
  0x93   : > { %v371_v48 = vsel %vm370_vm6, %v1182_v30, 0  ;;  %v372_v52 = vsel %vm370_vm6, %v1191_v34, 0 }
  0x94   : > { %391 = vrot.lane.b32.xlu0 %v302_v40, %s1099_s9  ;;  %429 = vrot.lane.b32.xlu1 %v357_v41, %s1100_s10 }
  0x95   : > { %v1250_v50 = vpop.permute.xlu0 %382 }
  0x96   : > { %vm384_vm9 = vcmp.ne.s16.totalorder %v1250_v50, 0 }
  0x97   : > { %v385_v54 = vsel %vm384_vm9, %v1182_v30, 0  ;;  %v386_v56 = vsel %vm384_vm9, %v1191_v34, 0 }
  0x98   : > { %397 = vrot.lane.b32.xlu0 %v315_v43, %s1101_s11  ;;  %431 = vrot.lane.b32.xlu1 %v358_v44, %s1100_s10 }
  0x9c   : > { %399 = vrot.lane.b32.xlu0 %v316_v47, %s1101_s11  ;;  %437 = vrot.lane.b32.xlu1 %v371_v48, %s1102_s14 }
  0xa0   : > { %405 = vrot.lane.b32.xlu0 %v329_v51, %s1103_s17  ;;  %439 = vrot.lane.b32.xlu1 %v372_v52, %s1102_s14 }
  0xa4   : > { %407 = vrot.lane.b32.xlu0 %v330_v53, %s1103_s17  ;;  %445 = vrot.lane.b32.xlu1 %v385_v54, %s1104_s21 }
  0xa8   : > { %447 = vrot.lane.b32.xlu0 %v386_v56, %s1104_s21  ;;  %453 = vperm.xlu1 %1062, %v244_v55  }
  0xac   : > { %463 = vperm.xlu1 %1062, %v246_v57   ;;  %458 = vperm.xlu0 %1063, %v245_v58  }
  0xb0   : > { %468 = vperm.xlu1 %1062, %v247_v59  }
  0xfa   : > { %v414_v61 = vpop.permute.xlu1 %413 }
  0xfb   : > { %957 = vmatprep.subr.bf16.mxu0 %v414_v61 }
  0xfc   : > { %958 = vmatpush3.bf16.msra.mxu0 %v287_v62 }
  0xfe   : > { %v422_v63 = vpop.permute.xlu1 %421  ;;  %v416_v0 = vpop.permute.xlu0 %415 }
  0xff   : > { %959 = vmatprep.subr.bf16.mxu0 %v416_v0 }
 0x100   : > { %960 = vmatpush3.bf16.msra.mxu0 %v288_v1 }
 0x101   : > { %961 = vmatprep.subr.bf16.mxu0 %v422_v63 }
 0x102   : > { %v424_v2 = vpop.permute.xlu1 %423  ;;  %v390_v3 = vpop.permute.xlu0 %389 }
 0x104   : > { %962 = vmatpush3.bf16.msra.mxu0 %v390_v3 }
 0x105   : > { %963 = vmatprep.subr.bf16.mxu0 %v424_v2 }
 0x106   : > { %v430_v4 = vpop.permute.xlu1 %429  ;;  %v392_v5 = vpop.permute.xlu0 %391 }
 0x108   : > { %964 = vmatpush3.bf16.msra.mxu0 %v392_v5 }
 0x109   : > { %965 = vmatprep.subr.bf16.mxu0 %v430_v4 }
 0x10a   : > { %v432_v8 = vpop.permute.xlu1 %431  ;;  %v398_v9 = vpop.permute.xlu0 %397 }
 0x10c   : > { %966 = vmatpush3.bf16.msra.mxu0 %v398_v9 }
 0x10d   : > { %967 = vmatprep.subr.bf16.mxu0 %v432_v8 }
 0x10e   : > { %v438_v10 = vpop.permute.xlu1 %437  ;;  %v400_v13 = vpop.permute.xlu0 %399 }
 0x110   : > { %968 = vmatpush3.bf16.msra.mxu0 %v400_v13 }
 0x111   : > { %969 = vmatprep.subr.bf16.mxu0 %v438_v10 }
 0x112   : > { %v440_v14 = vpop.permute.xlu1 %439  ;;  %v406_v15 = vpop.permute.xlu0 %405 }
 0x114   : > { %970 = vmatpush3.bf16.msra.mxu0 %v406_v15 }
 0x115   : > { %971 = vmatprep.subr.bf16.mxu0 %v440_v14 }
 0x116   : > { %v446_v16 = vpop.permute.xlu1 %445  ;;  %v408_v17 = vpop.permute.xlu0 %407 }
 0x117   : > { %1021 = vmatprep.subr.bf16.mxu1 %v446_v16 }
 0x118   : > { %972 = vmatpush3.bf16.msra.mxu0 %v408_v17  ;;  %1022 = vmatpush3.bf16.msra.mxu1 %v446_v16 }
 0x11a   : > { %v448_v20 = vpop.permute.xlu0 %447 }
 0x11b   : > { %541 = vmatmul.mubr.bf16.vlgmr.msra.gmra.mrb[0].mxu0 %v1064_v18  ;;  %1023 = vmatprep.subr.bf16.mxu1 %v448_v20 }
 0x11c   : > { %1024 = vmatpush3.bf16.msra.mxu1 %v448_v20  ;;  %548 = vmatprep.mubr.bf16.mxu0 %v1069_v19  ;;  %v1075_v19 = vld [vmem:[%s1416_s2 + $0x8] ss:$12 sps:$4 sm:$0xff]  }
 0x11f   : > { %1026 = vmatmul.mubr.msk.bf16.vlgmr.msra.gmra.mrb[0].mxu1 %vm501_vm8, %v1068_v21 }
 0x120   : > { %794 = vmatprep.mubr.bf16.mxu1 %v1074_v31 }
 0x123   : > { %549 = vmatmul.mubr.bf16.gmra.mrb[4].mxu0 %v1071_v22  ;;  %v250_v22 = vld [vmem:[%s1418_s4 + $0x10] sm:$0xff] }
 0x124   : > { %1033 = vmatprep.mubr.msk.bf16.mxu0 %vm501_vm8, %v1075_v19 }
 0x127   : > { %v454_v24 = vpop.permute.xlu1 %453 }
 0x12b   : > { %v459_v30 = vpop.permute.xlu0 %458  ;;  %v464_v41 = vpop.permute.xlu1 %463 }
 0x12f   : > { %v469_v57 = vpop.permute.xlu1 %468 }
 0x1ee   : > { %v973_v23 = vpop.f32.mrb[0].mxu0 }
 0x1ef   : > { %v974_v25 = vpop.f32.mrb[1].mxu0 }
 0x1f0   : > { %v975_v26 = vadd.f32 %v974_v25, %v973_v23  ;;  %v976_v28 = vpop.f32.mrb[2].mxu0 }
 0x1f1   : > { %v977_v29 = vpop.f32.mrb[3].mxu0 }
 0x1f2   : > { %v978_v32 = vadd.f32 %v977_v29, %v976_v28  ;;  %v1027_v33 = vpop.f32.mrb[0].mxu1  ;;  %v543_v34 = vadd.f32 %v975_v26, %v454_v24  ;;  %v249_v24 = vld [vmem:[%s1418_s4 + $0x8] sm:$0xff] }
 0x1f3   : > { %v591_v35 = vpop.f32.mrb[1].mxu1 }
 0x1f4   : > { %v592_v37 = vadd.f32 %v591_v35, %v543_v34  ;;  %v546_v38 = vadd.f32 %v978_v32, %v459_v30  ;;  %v1028_v40 = vpop.f32.mrb[2].mxu1 }
 0x1f5   : > { %v594_v43 = vpop.f32.mrb[3].mxu1 }
 0x1f6   : > { %v595_v44 = vadd.f32 %v594_v43, %v546_v38  ;;  %v979_v45 = vpop.f32.mrb[4].mxu0  ;;  %v606_v48 = vmax.f32 %v592_v37, 0.0 }
 0x1f7   : > { %v980_v47 = vpop.f32.mrb[5].mxu0 }
 0x1f8   : > { %v607_v49 = vmax.f32 %v595_v44, 0.0  ;;  %v981_v51 = vadd.f32 %v980_v47, %v979_v45  ;;  %v982_v52 = vpop.f32.mrb[6].mxu0  ;;  %v1072_v45 = vld [vmem:[%s1416_s2] ss:$12 sps:$4 sm:$0xff]   ;;  %v1077_v47 = vld [vmem:[%s1416_s2 + $0x1c] ss:$12 sps:$4 sm:$0xff]  }
 0x1f9   : > { %v983_v53 = vpop.f32.mrb[7].mxu0 }
 0x1fa   : > { %v610_v54 = vpack.c.bf16 %v607_v49, %v606_v48  ;;  %v551_v55 = vadd.f32 %v981_v51, %v464_v41  ;;  %v984_v56 = vadd.f32 %v983_v53, %v982_v52  ;;  %v1076_v49 = vld [vmem:[%s1416_s2 + $0x20] ss:$12 sps:$4 sm:$0xff]   ;;  %v1079_v51 = vld [vmem:[%s1416_s2 + $0x18] ss:$12 sps:$4 sm:$0xff]  }
 0x1fc   : > { %v600_v58 = vadd.f32 %v1027_v33, %v551_v55  ;;  %v554_v59 = vadd.f32 %v984_v56, %v469_v57  ;;  %614 = vrot.lane.b32.xlu0 %v610_v54, %s1090_s25 }
 0x1fe   : > { %v603_v61 = vadd.f32 %v1028_v40, %v554_v59  ;;  %v608_v62 = vmax.f32 %v600_v58, 0.0 }
 0x200   : > { %v609_v63 = vmax.f32 %v603_v61, 0.0 }
 0x202   : > { %v611_v0 = vpack.c.bf16 %v609_v63, %v608_v62 }
 0x204   : > { %616 = vrot.lane.b32.xlu1 %v611_v0, %s1090_s25  ;;  %s224_s25 = scalar_lea.vmem %s1419_s5, %s955_s20 }
 0x26e   : > { %v615_v1 = vpop.permute.xlu0 %614 }
 0x26f   : > { %v619_v2 = vsel %vm266_vm0, 0, %v615_v1 }
 0x270   : > { %v622_v3 = vsel %vm272_vm1, %v619_v2, 0 }
 0x271   : > { %668 = vrot.lane.b32.xlu0 %v622_v3, %s1097_s7  ;;  %v634_v4 = vsel %vm342_vm2, %v622_v3, 0  ;;  %v628_v13 = vsel %vm300_vm3, %v622_v3, 0  ;;  %v636_v14 = vsel %vm356_vm4, %v622_v3, 0  ;;  %v630_v16 = vsel %vm314_vm5, %v622_v3, 0 }
 0x272   : > { %v638_v17 = vsel %vm370_vm6, %v622_v3, 0  ;;  %v632_v20 = vsel %vm328_vm7, %v622_v3, 0  ;;  %v640_v39 = vsel %vm384_vm9, %v622_v3, 0  ;;  %v626_v26 = vsel %vm1289_vm10, %v622_v3, 0 }
 0x275   : > { %676 = vrot.lane.b32.xlu0 %v634_v4, %s1098_s8 }
 0x276   : > { %v617_v5 = vpop.permute.xlu1 %616 }
 0x277   : > { %v621_v8 = vsel %vm266_vm0, 0, %v617_v5 }
 0x278   : > { %v624_v9 = vsel %vm272_vm1, %v621_v8, 0 }
 0x279   : > { %670 = vrot.lane.b32.xlu1 %v624_v9, %s1097_s7  ;;  %v635_v10 = vsel %vm342_vm2, %v624_v9, 0  ;;  %v629_v15 = vsel %vm300_vm3, %v624_v9, 0  ;;  %v637_v27 = vsel %vm356_vm4, %v624_v9, 0  ;;  %v631_v36 = vsel %vm314_vm5, %v624_v9, 0 }
 0x27a   : > { %678 = vrot.lane.b32.xlu0 %v635_v10, %s1098_s8  ;;  %v639_v18 = vsel %vm370_vm6, %v624_v9, 0  ;;  %v633_v21 = vsel %vm328_vm7, %v624_v9, 0  ;;  %v641_v23 = vsel %vm384_vm9, %v624_v9, 0  ;;  %v627_v30 = vsel %vm1289_vm10, %v624_v9, 0 }
 0x27d   : > { %644 = vrot.lane.b32.xlu1 %v628_v13, %s1099_s9 }
 0x27e   : > { %684 = vrot.lane.b32.xlu0 %v636_v14, %s1100_s10 }
 0x281   : > { %646 = vrot.lane.b32.xlu1 %v629_v15, %s1099_s9 }
 0x282   : > { %686 = vrot.lane.b32.xlu0 %v637_v27, %s1100_s10 }
 0x285   : > { %652 = vrot.lane.b32.xlu1 %v630_v16, %s1101_s11 }
 0x286   : > { %692 = vrot.lane.b32.xlu0 %v638_v17, %s1102_s14 }
 0x289   : > { %654 = vrot.lane.b32.xlu1 %v631_v36, %s1101_s11 }
 0x28a   : > { %694 = vrot.lane.b32.xlu0 %v639_v18, %s1102_s14 }
 0x28d   : > { %660 = vrot.lane.b32.xlu1 %v632_v20, %s1103_s17 }
 0x28e   : > { %700 = vrot.lane.b32.xlu0 %v640_v39, %s1104_s21 }
 0x291   : > { %662 = vrot.lane.b32.xlu1 %v633_v21, %s1103_s17 }
 0x292   : > { %708 = vperm.xlu0 %1063, %v248_v42  }
 0x295   : > { %702 = vrot.lane.b32.xlu1 %v641_v23, %s1104_s21 }
 0x296   : > { %718 = vperm.xlu0 %1063, %v250_v22  }
 0x299   : > { %713 = vperm.xlu1 %1062, %v249_v24  }
 0x29d   : > { %723 = vperm.xlu1 %1062, %v251_v46  }
 0x2e3   : > { %v669_v25 = vpop.permute.xlu0 %668 }
 0x2e4   : > { %989 = vmatprep.subr.bf16.mxu1 %v669_v25 }
 0x2e5   : > { %990 = vmatpush3.bf16.msra.mxu1 %v626_v26 }
 0x2e7   : > { %v677_v50 = vpop.permute.xlu0 %676 }
 0x2eb   : > { %v671_v28 = vpop.permute.xlu1 %670 }
 0x2ec   : > { %v679_v29 = vpop.permute.xlu0 %678  ;;  %991 = vmatprep.subr.bf16.mxu1 %v671_v28 }
 0x2ed   : > { %992 = vmatpush3.bf16.msra.mxu1 %v627_v30 }
 0x2ee   : > { %993 = vmatprep.subr.bf16.mxu1 %v677_v50 }
 0x2ef   : > { %v645_v32 = vpop.permute.xlu1 %644 }
 0x2f0   : > { %v685_v33 = vpop.permute.xlu0 %684 }
 0x2f1   : > { %994 = vmatpush3.bf16.msra.mxu1 %v645_v32 }
 0x2f2   : > { %995 = vmatprep.subr.bf16.mxu1 %v679_v29 }
 0x2f3   : > { %v647_v34 = vpop.permute.xlu1 %646 }
 0x2f4   : > { %v687_v35 = vpop.permute.xlu0 %686 }
 0x2f5   : > { %996 = vmatpush3.bf16.msra.mxu1 %v647_v34 }
 0x2f6   : > { %997 = vmatprep.subr.bf16.mxu1 %v685_v33 }
 0x2f7   : > { %v653_v37 = vpop.permute.xlu1 %652 }
 0x2f8   : > { %v693_v38 = vpop.permute.xlu0 %692 }
 0x2f9   : > { %998 = vmatpush3.bf16.msra.mxu1 %v653_v37 }
 0x2fa   : > { %999 = vmatprep.subr.bf16.mxu1 %v687_v35 }
 0x2fb   : > { %v655_v40 = vpop.permute.xlu1 %654 }
 0x2fc   : > { %v695_v41 = vpop.permute.xlu0 %694 }
 0x2fd   : > { %1000 = vmatpush3.bf16.msra.mxu1 %v655_v40 }
 0x2fe   : > { %1001 = vmatprep.subr.bf16.mxu1 %v693_v38 }
 0x2ff   : > { %v661_v60 = vpop.permute.xlu1 %660 }
 0x300   : > { %v701_v43 = vpop.permute.xlu0 %700 }
 0x301   : > { %1002 = vmatpush3.bf16.msra.mxu1 %v661_v60  ;;  %1029 = vmatprep.subr.bf16.mxu0 %v701_v43 }
 0x302   : > { %1003 = vmatprep.subr.bf16.mxu1 %v695_v41  ;;  %1030 = vmatpush3.bf16.msra.mxu0 %v701_v43 }
 0x303   : > { %v663_v44 = vpop.permute.xlu1 %662 }
 0x305   : > { %1004 = vmatpush3.bf16.msra.mxu1 %v663_v44 }
 0x307   : > { %v703_v48 = vpop.permute.xlu1 %702 }
 0x308   : > { %795 = vmatmul.mubr.bf16.vlgmr.msra.gmra.mrb[4].mxu1 %v1072_v45  ;;  %1031 = vmatprep.subr.bf16.mxu0 %v703_v48 }
 0x309   : > { %1032 = vmatpush3.bf16.msra.mxu0 %v703_v48  ;;  %802 = vmatprep.mubr.bf16.mxu1 %v1077_v47 }
 0x30c   : > { %1034 = vmatmul.mubr.msk.bf16.vlgmr.msra.gmra.mrb[8].mxu0 %vm501_vm8, %v1076_v49 }
 0x310   : > { %803 = vmatmul.mubr.bf16.gmra.mrb[8].mxu1 %v1079_v51 }
 0x311   : > { %v709_v56 = vpop.permute.xlu0 %708 }
 0x315   : > { %v719_v27 = vpop.permute.xlu0 %718 }
 0x318   : > { %v714_v62 = vpop.permute.xlu1 %713 }
 0x31c   : > { %v724_v18 = vpop.permute.xlu1 %723 }
 0x3db   : > { %v1005_v52 = vpop.f32.mrb[4].mxu1 }
 0x3dc   : > { %v1006_v53 = vpop.f32.mrb[5].mxu1 }
 0x3dd   : > { %v1007_v54 = vadd.f32 %v1006_v53, %v1005_v52  ;;  %v1008_v55 = vpop.f32.mrb[6].mxu1 }
 0x3de   : > { %v1009_v57 = vpop.f32.mrb[7].mxu1 }
 0x3df   : > { %v1010_v58 = vadd.f32 %v1009_v57, %v1008_v55  ;;  %v1035_v59 = vpop.f32.mrb[8].mxu0  ;;  %v797_v61 = vadd.f32 %v1007_v54, %v709_v56 }
 0x3e0   : > { %v845_v63 = vpop.f32.mrb[9].mxu0 }
 0x3e1   : > { %v846_v0 = vadd.f32 %v845_v63, %v797_v61  ;;  %v1036_v1 = vpop.f32.mrb[10].mxu0  ;;  %v800_v2 = vadd.f32 %v1010_v58, %v714_v62 }
 0x3e2   : > { %v848_v3 = vpop.f32.mrb[11].mxu0 }
 0x3e3   : > { %v860_v4 = vmax.f32 %v846_v0, 0.0  ;;  %v849_v5 = vadd.f32 %v848_v3, %v800_v2  ;;  %v1011_v8 = vpop.f32.mrb[8].mxu1 }
 0x3e4   : > { %v1012_v9 = vpop.f32.mrb[9].mxu1 }
 0x3e5   : > { %v864_v10 = vadd.f32 %v860_v4, %v1153_v6  ;;  %v861_v13 = vmax.f32 %v849_v5, 0.0  ;;  %v1013_v14 = vadd.f32 %v1012_v9, %v1011_v8  ;;  %v1014_v15 = vpop.f32.mrb[10].mxu1 }
 0x3e6   : > { %v1015_v16 = vpop.f32.mrb[11].mxu1 }
 0x3e7   : > { %869 = vst.msk [vmem:[%s224_s25] sm:$0xff] %vm868_vm11, %v864_v10  ;;  %v865_v17 = vadd.f32 %v861_v13, %v1155_v7  ;;  %v805_v31 = vadd.f32 %v1013_v14, %v719_v27  ;;  %v1016_v36 = vadd.f32 %v1015_v16, %v1014_v15 }
 0x3e9   : > { %870 = vst.msk [vmem:[%s224_s25 + $0x8] sm:$0xff] %vm868_vm11, %v865_v17  ;;  %v854_v19 = vadd.f32 %v1035_v59, %v805_v31  ;;  %v808_v20 = vadd.f32 %v1016_v36, %v724_v18 }
 0x3eb   : > { %v862_v39 = vmax.f32 %v854_v19, 0.0  ;;  %v857_v42 = vadd.f32 %v1036_v1, %v808_v20 }
 0x3ed   : > { %v866_v6 = vadd.f32 %v862_v39, %v1160_v11  ;;  %v863_v21 = vmax.f32 %v857_v42, 0.0 }
 0x3ef   : > { %871 = vst.msk [vmem:[%s224_s25 + $0x10] sm:$0xff] %vm868_vm11, %v866_v6  ;;  %v867_v22 = vadd.f32 %v863_v21, %v1162_v12 }
 0x3f1   : > { %872 = vst.msk [vmem:[%s224_s25 + $0x18] sm:$0xff] %vm868_vm11, %v867_v22 }
 0x3f2 PF: > { %s15_s18 = sadd.s32 1, %s1086_s18  }
 0x3f3   : > { %p12_p4 = scmp.ge.s32.totalorder %s15_s18, 4  }
 0x3f5   :  { %14 = sbr.rel (!%p12_p4) target bundleno = 1 (0x1), region = 70 }

</bundles_post_ra>
